<compile_context>
chip_gen: v7x
topology: tpu7x:2x2x1
jax: 0.10.0
libtpu: 0.0.40
codegen_flags: <defaults>
</compile_context>

<pallas_src>
import functools

import jax
import jax.numpy as jnp
from jax.experimental import pallas as pl
from jax.experimental.pallas import tpu as pltpu

LANES = 128
SUBLANES = 8
MAX_BLOCK_ROWS = 2048  # 2048*128*4B = 1 MiB per f32 input buffer


def _mse_block_kernel(pred_ref, real_ref, out_ref, *, block_rows, valid_rows,
                      needs_mask):
    """Per-block partial sum of (real - pred)^2, folded to an (8, 128) vreg."""
    d = real_ref[...].astype(jnp.float32) - pred_ref[...].astype(jnp.float32)
    sq = d * d
    if needs_mask:
        # Last grid step may cover rows past the end of the array (Pallas pads
        # the boundary block with unspecified data) -- zero those rows out.
        step = pl.program_id(0)
        row = step * block_rows + jax.lax.broadcasted_iota(
            jnp.int32, sq.shape, 0)
        sq = jnp.where(row < valid_rows, sq, 0.0)
    # (block_rows, 128) -> (block_rows//8, 8, 128); reduce over the major dim.
    # Pure VPU adds; the expensive cross-lane reduction is deferred to the
    # wrapper (one tiny XLA reduce over all partials).
    out_ref[...] = jnp.sum(
        sq.reshape(block_rows // SUBLANES, SUBLANES, LANES), axis=0)


@jax.jit
def mse(pred, real):
    assert pred.shape == real.shape, "pred/real must have identical shapes"
    n = pred.size  # torch.numel(diffs)

    pred_flat = jnp.ravel(pred)  # keep native dtype; upcast happens in-kernel
    real_flat = jnp.ravel(real)

    vreg_elems = SUBLANES * LANES  # 1024
    n_kernel = (n // vreg_elems) * vreg_elems  # aligned prefix for the kernel

    total = jnp.zeros((), jnp.float32)

    if n_kernel:
        rows = n_kernel // LANES            # multiple of 8 by construction
        block_rows = min(MAX_BLOCK_ROWS, rows)
        num_blocks = pl.cdiv(rows, block_rows)
        needs_mask = (rows % block_rows) != 0

        pred2d = pred_flat[:n_kernel].reshape(rows, LANES)
        real2d = real_flat[:n_kernel].reshape(rows, LANES)

        kernel = functools.partial(
            _mse_block_kernel,
            block_rows=block_rows,
            valid_rows=rows,
            needs_mask=needs_mask,
        )

        partials = pl.pallas_call(
            kernel,
            out_shape=jax.ShapeDtypeStruct(
                (num_blocks * SUBLANES, LANES), jnp.float32),
            grid_spec=pltpu.PrefetchScalarGridSpec(
                num_scalar_prefetch=0,
                grid=(num_blocks,),
                in_specs=[
                    pl.BlockSpec((block_rows, LANES), lambda i: (i, 0)),
                    pl.BlockSpec((block_rows, LANES), lambda i: (i, 0)),
                ],
                out_specs=pl.BlockSpec((SUBLANES, LANES), lambda i: (i, 0)),
            ),
            compiler_params=pltpu.CompilerParams(
                # Blocks are independent partial sums -> fully parallel grid
                # (lets v7x shard the loop across both TensorCores).
                dimension_semantics=("parallel",),
            ),
        )(pred2d, real2d)

        total = total + jnp.sum(partials, dtype=jnp.float32)

    # Ragged tail (< 1024 elements): negligible, handled in plain JAX so the
    # kernel path never needs a full-array pad/copy.
    n_tail = n - n_kernel
    if n_tail:
        pt = pred_flat[n_kernel:].astype(jnp.float32)
        rt = real_flat[n_kernel:].astype(jnp.float32)
        total = total + jnp.sum((rt - pt) ** 2)

    return (total / jnp.float32(n)).astype(jnp.float32)


if __name__ == "__main__":
    key = jax.random.PRNGKey(0)
    kp, kr = jax.random.split(key)
    # Small shapes consistent with a dense prediction module: NCHW.
    pred = jax.random.normal(kp, (2, 4, 16, 16), dtype=jnp.float32)
    real = jax.random.normal(kr, (2, 4, 16, 16), dtype=jnp.float32)

    out = mse(pred, real)
    jax.block_until_ready(out)

    # Cross-check against pure-JAX reference of the PyTorch semantics.
    ref = jnp.sum((real - pred) ** 2) / pred.size
    assert jnp.allclose(out, ref, rtol=1e-6, atol=1e-6), (out, ref)

    print("KERNEL_OK")
</pallas_src>

<mosaic_0001>
module attributes {stable_mosaic.version = 11 : i64} {
  func.func @_mse_block_kernel(%arg0: i32, %arg1: memref<16x128xf32, #tpu.memory_space<vmem>>, %arg2: memref<16x128xf32, #tpu.memory_space<vmem>>, %arg3: memref<8x128xf32, #tpu.memory_space<vmem>>) attributes {dimension_semantics = [#tpu.dimension_semantics<parallel>], iteration_bounds = array<i64: 1>, scalar_prefetch = 0 : i64, scratch_operands = 0 : i64, tpu.core_type = #tpu.core_type<tc>, window_params = [{transform_indices = @transform_0, window_bounds = array<i64: 16, 128>}, {transform_indices = @transform_1, window_bounds = array<i64: 16, 128>}, {transform_indices = @transform_2, window_bounds = array<i64: 8, 128>}]} {
    %c0 = arith.constant 0 : index
    %c0_0 = arith.constant 0 : index
    %0 = vector.load %arg2[%c0, %c0_0] : memref<16x128xf32, #tpu.memory_space<vmem>>, vector<16x128xf32>
    %c0_1 = arith.constant 0 : index
    %c0_2 = arith.constant 0 : index
    %1 = vector.load %arg1[%c0_1, %c0_2] : memref<16x128xf32, #tpu.memory_space<vmem>>, vector<16x128xf32>
    %2 = arith.subf %0, %1 : vector<16x128xf32>
    %3 = arith.mulf %2, %2 : vector<16x128xf32>
    %4 = vector.shape_cast %3 : vector<16x128xf32> to vector<2x8x128xf32>
    %cst = arith.constant dense<0.000000e+00> : vector<8x128xf32>
    %5 = vector.multi_reduction <add>, %4, %cst [0] : vector<2x8x128xf32> to vector<8x128xf32>
    %c0_3 = arith.constant 0 : index
    %c0_4 = arith.constant 0 : index
    %6 = vector.load %arg3[%c0_3, %c0_4] : memref<8x128xf32, #tpu.memory_space<vmem>>, vector<8x128xf32>
    tpu.vector_store %arg3[%c0_3, %c0_4], %5 {strides = array<i32>} : memref<8x128xf32, #tpu.memory_space<vmem>>, vector<8x128xf32>,
    return
  }
  func.func @transform_0(%arg0: i32) -> (i32, i32) {
    %c0_i32 = arith.constant 0 : i32
    %c0_i32_0 = arith.constant 0 : i32
    return %arg0, %c0_i32 : i32, i32
  }
  func.func @transform_1(%arg0: i32) -> (i32, i32) {
    %c0_i32 = arith.constant 0 : i32
    %c0_i32_0 = arith.constant 0 : i32
    return %arg0, %c0_i32 : i32, i32
  }
  func.func @transform_2(%arg0: i32) -> (i32, i32) {
    %c0_i32 = arith.constant 0 : i32
    %c0_i32_0 = arith.constant 0 : i32
    return %arg0, %c0_i32 : i32, i32
  }
}

</mosaic_0001>

<bundles_post_ra>
// kernel: mse.1
= control target key start
LH: loop header
LB: loop body
LE: loop exit
PB: predicated region body
PF: predicated region fallthrough
CT: control target
= control target key end

     0   :  { %s55_s0 = inlined_call_operand.vmem [shape: f32[16,128], index: 0, kind: input, shape index: {}]   ;;  %s56_s1 = inlined_call_operand.vmem [shape: f32[16,128], index: 1, kind: input, shape index: {}]   ;;  %s57_s2 = inlined_call_operand.vmem [shape: f32[8,128], index: 2, kind: output, shape index: {}]  }
   0x1   :  { %v11_v0 = vld [vmem:[%s56_s1] sm:$0xff]  ;;  %v12_v1 = vld [vmem:[%s56_s1 + $0x8] sm:$0xff] }
   0x2   :  { %v13_v2 = vld [vmem:[%s55_s0] sm:$0xff]  ;;  %v14_v3 = vld [vmem:[%s55_s0 + $0x8] sm:$0xff] }
   0x3   :  { %v15_v4 = vsub.f32 %v11_v0, %v13_v2  ;;  %v16_v5 = vsub.f32 %v12_v1, %v14_v3 }
   0x5   :  { %v17_v6 = vmul.f32 %v15_v4, %v15_v4  ;;  %v18_v7 = vmul.f32 %v16_v5, %v16_v5 }
   0x7   :  { %v19_v8 = vadd.f32 %v18_v7, %v17_v6 }
   0x9   :  { %20 = vst [vmem:[%s57_s2] sm:$0xff] %v19_v8 }

</bundles_post_ra>
